<compile_context>
chip_gen: v6e
topology: v6e:2x2x1
jax: 0.10.0
libtpu: 0.0.40
codegen_flags: <defaults>
</compile_context>

<pallas_src>
import functools

import jax
import jax.numpy as jnp
from jax.experimental import pallas as pl
from jax.experimental.pallas import tpu as pltpu


def _round_up(x, m):
    return (x + m - 1) // m * m


def ffn_layer_kernel(x_ref, k_ref, hx_ref, hk_ref,
                     g_ref, beta_ref, wc_ref, bc_ref, w2_ref, b2_ref,
                     o_ref, ext_ref, *, kernel_size, pad, h_true, tt, hp):
    g = g_ref[...]                     # (1, Hp) f32 (zero-padded channels)
    beta = beta_ref[...]               # (1, Hp) f32
    inv_h = 1.0 / h_true
    extra = hp - h_true                # number of zero-padded channels

    def ln_mask(x, keep):
        # LayerNorm over the TRUE hidden size (padded channels are zero and
        # corrected out of the variance), then padding-mask, then bf16.
        mean = jnp.sum(x, axis=-1, keepdims=True) * inv_h
        d = x - mean
        ssq = jnp.sum(d * d, axis=-1, keepdims=True) - extra * (mean * mean)
        var = ssq * inv_h
        xn = d * jax.lax.rsqrt(var + 1e-6)
        return ((xn * g + beta) * keep).astype(jnp.bfloat16)

    # ---- LayerNorm + mask for the centre tile and the conv halo rows ------
    x_cur = x_ref[0]                                      # (Tt, Hp) f32
    ext_ref[pad:pad + tt, :] = ln_mask(x_cur, k_ref[0])
    if pad > 0:
        hx = hx_ref[0, 0]                                 # (Hr, Hp) f32
        hk = hk_ref[0, 0]                                 # (Hr, 1)  f32
        ext_ref[0:pad, :] = ln_mask(hx[0:pad, :], hk[0:pad, :])
        ext_ref[pad + tt:2 * pad + tt, :] = ln_mask(hx[pad:2 * pad, :],
                                                    hk[pad:2 * pad, :])

    # ---- ffn_1: Conv1d(hidden -> filter, K, SAME) as ONE fused matmul -----
    # im2col slab: column block k holds ext rows [k, k+Tt) (bf16).
    slab = jnp.concatenate(
        [ext_ref[k:k + tt, :] for k in range(kernel_size)], axis=1)  # (Tt, K*Hp)
    acc = jnp.dot(slab, wc_ref[...],
                  preferred_element_type=jnp.float32) + bc_ref[...]  # (Tt, Fp)

    # ---- activation --------------------------------------------------------
    # TODO(synk): build_activation() source is unavailable; ReLU is assumed.
    h = jnp.maximum(acc, 0.0).astype(jnp.bfloat16)

    # dropout: eval-mode (training=False) -> identity.

    # ---- ffn_2: Linear(filter -> hidden) + residual ------------------------
    y = jnp.dot(h, w2_ref[...],
                preferred_element_type=jnp.float32) + b2_ref[...]    # (Tt, Hp)
    o_ref[0] = x_cur + y


def enc_transformer_ffn_layer(x_tbh, mask_bt, params, *, kernel_size, t_tile=256):
    """x_tbh: (T, B, H) float32.  mask_bt: (B, T) bool (True = padded)."""
    T, B, H = x_tbh.shape
    K = kernel_size
    F_ = params["w_conv"].shape[-1]
    pad = K // 2  # NOTE: matches torch SAME padding only for odd K.

    Hp = _round_up(H, 128)
    Fp = _round_up(F_, 128)
    Tt = _round_up(min(t_tile, _round_up(T, 8)), 8)
    assert pad <= Tt, "conv halo must fit within one time tile"
    Tp = _round_up(T, Tt)
    nt = Tp // Tt
    Hr = max(8, _round_up(2 * pad, 8))        # sublane-rounded halo rows

    x_bth = jnp.transpose(x_tbh, (1, 0, 2)).astype(jnp.float32)       # (B, T, H)
    keep = (~mask_bt).astype(jnp.float32)                             # (B, T)

    # ---- main tiles (T padded to a tile multiple, H padded to 128) ---------
    x_main = jnp.pad(x_bth, ((0, 0), (0, Tp - T), (0, Hp - H)))        # (B, Tp, Hp)
    keep_main = jnp.pad(keep, ((0, 0), (0, Tp - T)))[..., None]        # (B, Tp, 1)

    # ---- per-tile conv halos: the `pad` rows before and after each tile ----
    # (zero x / zero keep outside [0, T), so halo contributions vanish there)
    x_src = jnp.pad(x_bth, ((0, 0), (pad, Tp - T + Tt), (0, Hp - H)))  # (B, Tp+pad+Tt, Hp)
    k_src = jnp.pad(keep, ((0, 0), (pad, Tp - T + Tt)))                # (B, Tp+pad+Tt)
    left_x = x_src[:, :Tp].reshape(B, nt, Tt, Hp)[:, :, :pad]
    right_x = x_src[:, pad + Tt:pad + Tt + Tp].reshape(B, nt, Tt, Hp)[:, :, :pad]
    left_k = k_src[:, :Tp].reshape(B, nt, Tt)[:, :, :pad]
    right_k = k_src[:, pad + Tt:pad + Tt + Tp].reshape(B, nt, Tt)[:, :, :pad]
    halo_x = jnp.pad(jnp.concatenate([left_x, right_x], axis=2),
                     ((0, 0), (0, 0), (0, Hr - 2 * pad), (0, 0)))      # (B, nt, Hr, Hp)
    halo_k = jnp.pad(jnp.concatenate([left_k, right_k], axis=2),
                     ((0, 0), (0, 0), (0, Hr - 2 * pad)))[..., None]   # (B, nt, Hr, 1)

    # ---- parameters (channel-padded; padding is zero so it never leaks) ----
    gamma = jnp.pad(params["ln_gamma"].astype(jnp.float32), (0, Hp - H)).reshape(1, Hp)
    beta = jnp.pad(params["ln_beta"].astype(jnp.float32), (0, Hp - H)).reshape(1, Hp)
    wc = jnp.pad(params["w_conv"].astype(jnp.float32),
                 ((0, 0), (0, Hp - H), (0, Fp - F_)))
    wc_flat = wc.reshape(K * Hp, Fp).astype(jnp.bfloat16)              # (K*Hp, Fp)
    bc = jnp.pad(params["b_conv"].astype(jnp.float32), (0, Fp - F_)).reshape(1, Fp)
    w2 = jnp.pad(params["w2"].astype(jnp.float32),
                 ((0, Fp - F_), (0, Hp - H))).astype(jnp.bfloat16)     # (Fp, Hp)
    b2 = jnp.pad(params["b2"].astype(jnp.float32), (0, Hp - H)).reshape(1, Hp)

    kernel = functools.partial(ffn_layer_kernel, kernel_size=K, pad=pad,
                               h_true=H, tt=Tt, hp=Hp)

    out_bth = pl.pallas_call(
        kernel,
        out_shape=jax.ShapeDtypeStruct((B, Tp, Hp), jnp.float32),
        grid=(B, nt),
        in_specs=[
            pl.BlockSpec((1, Tt, Hp), lambda b, t: (b, t, 0)),        # x tile
            pl.BlockSpec((1, Tt, 1), lambda b, t: (b, t, 0)),         # keep tile
            pl.BlockSpec((1, 1, Hr, Hp), lambda b, t: (b, t, 0, 0)),  # x halo rows
            pl.BlockSpec((1, 1, Hr, 1), lambda b, t: (b, t, 0, 0)),   # keep halo rows
            pl.BlockSpec((1, Hp), lambda b, t: (0, 0)),               # ln gamma
            pl.BlockSpec((1, Hp), lambda b, t: (0, 0)),               # ln beta
            pl.BlockSpec((K * Hp, Fp), lambda b, t: (0, 0)),          # conv W (K*Hp,Fp)
            pl.BlockSpec((1, Fp), lambda b, t: (0, 0)),               # conv bias
            pl.BlockSpec((Fp, Hp), lambda b, t: (0, 0)),              # ffn_2 W^T
            pl.BlockSpec((1, Hp), lambda b, t: (0, 0)),               # ffn_2 bias
        ],
        out_specs=pl.BlockSpec((1, Tt, Hp), lambda b, t: (b, t, 0)),
        scratch_shapes=[
            pltpu.VMEM((_round_up(Tt + 2 * pad, 8), Hp), jnp.bfloat16)],
        compiler_params=pltpu.CompilerParams(
            dimension_semantics=("parallel", "parallel"),
            vmem_limit_bytes=48 * 1024 * 1024),
    )(x_main, keep_main, halo_x, halo_k,
      gamma, beta, wc_flat, bc, w2, b2)

    out_bth = out_bth[:, :T, :H]
    return jnp.transpose(out_bth, (1, 0, 2))                          # (T, B, H)


def reference(x_tbh, mask_bt, params, kernel_size):
    """Pure-JAX f32 reference matching the PyTorch forward (eval mode, ReLU)."""
    g, bt = params["ln_gamma"], params["ln_beta"]
    mean = x_tbh.mean(-1, keepdims=True)
    var = ((x_tbh - mean) ** 2).mean(-1, keepdims=True)
    xn = (x_tbh - mean) / jnp.sqrt(var + 1e-6) * g + bt
    xn = jnp.where(jnp.transpose(mask_bt)[:, :, None], 0.0, xn)       # (T,B,1) mask
    xc = jnp.transpose(xn, (1, 2, 0))                                 # (B, H, T)
    w_torch = jnp.transpose(params["w_conv"], (2, 1, 0))              # (F, H, K)
    y = jax.lax.conv_general_dilated(
        xc, w_torch, window_strides=(1,),
        padding=[(kernel_size // 2, kernel_size // 2)],
        dimension_numbers=("NCH", "OIH", "NCH"))
    y = y + params["b_conv"][None, :, None]
    y = jnp.transpose(y, (2, 0, 1))                                   # (T, B, F)
    y = jnp.maximum(y, 0.0)
    y = y @ params["w2"] + params["b2"]
    return x_tbh + y


def _make_case(key, T, B, H, F_, K, lengths):
    k_x, k_g, k_b, k_wc, k_w2 = jax.random.split(key, 5)
    x = jax.random.normal(k_x, (T, B, H), dtype=jnp.float32)
    mask_bt = jnp.arange(T)[None, :] >= jnp.asarray(lengths, jnp.int32)[:, None]
    params = {
        "ln_gamma": 1.0 + 0.05 * jax.random.normal(k_g, (H,), dtype=jnp.float32),
        "ln_beta": 0.05 * jax.random.normal(k_b, (H,), dtype=jnp.float32),
        # Conv1d weight stored tap-major: (K, H, F) so w_conv[k] == W_torch[:, :, k].T
        "w_conv": (jax.random.normal(k_wc, (K, H, F_), dtype=jnp.float32)
                   * (1.0 / jnp.sqrt(H * K))),
        "b_conv": 0.01 * jnp.arange(F_, dtype=jnp.float32),
        # Linear(filter, hidden): torch weight (H, F); stored transposed (F, H)
        "w2": (jax.random.normal(k_w2, (F_, H), dtype=jnp.float32)
               * jnp.sqrt(6.0 / (F_ + H))),
        "b2": 0.01 * jnp.arange(H, dtype=jnp.float32),
    }
    return x, mask_bt, params


if __name__ == "__main__":
    key = jax.random.PRNGKey(0)
    k1, k2 = jax.random.split(key)

    # Case 1: toy shapes (single T tile).
    T, B, H, F_, K = 8, 2, 32, 64, 5
    x, mask_bt, params = _make_case(k1, T, B, H, F_, K, lengths=[8, 6])
    out = enc_transformer_ffn_layer(x, mask_bt, params, kernel_size=K)
    out = jax.block_until_ready(out)
    ref = reference(x, mask_bt, params, K)
    assert out.shape == (T, B, H)
    assert jnp.allclose(out, ref, atol=5e-2, rtol=5e-2), (
        float(jnp.max(jnp.abs(out - ref))))

    # Case 2: multiple T tiles -> exercises the cross-tile conv halo + T padding.
    T2, B2, H2, F2, K2 = 40, 3, 48, 96, 5
    x2, mask2, params2 = _make_case(k2, T2, B2, H2, F2, K2, lengths=[40, 33, 17])
    out2 = enc_transformer_ffn_layer(x2, mask2, params2, kernel_size=K2, t_tile=16)
    out2 = jax.block_until_ready(out2)
    ref2 = reference(x2, mask2, params2, K2)
    assert out2.shape == (T2, B2, H2)
    assert jnp.allclose(out2, ref2, atol=5e-2, rtol=5e-2), (
        float(jnp.max(jnp.abs(out2 - ref2))))

    print("KERNEL_OK")
</pallas_src>

<mosaic_0001>
module attributes {stable_mosaic.version = 11 : i64} {
  func.func @ffn_layer_kernel(%arg0: i32, %arg1: i32, %arg2: memref<1x8x128xf32, #tpu.memory_space<vmem>>, %arg3: memref<1x8x1xf32, #tpu.memory_space<vmem>>, %arg4: memref<1x1x8x128xf32, #tpu.memory_space<vmem>>, %arg5: memref<1x1x8x1xf32, #tpu.memory_space<vmem>>, %arg6: memref<1x128xf32, #tpu.memory_space<vmem>>, %arg7: memref<1x128xf32, #tpu.memory_space<vmem>>, %arg8: memref<640x128xbf16, #tpu.memory_space<vmem>>, %arg9: memref<1x128xf32, #tpu.memory_space<vmem>>, %arg10: memref<128x128xbf16, #tpu.memory_space<vmem>>, %arg11: memref<1x128xf32, #tpu.memory_space<vmem>>, %arg12: memref<1x8x128xf32, #tpu.memory_space<vmem>>, %arg13: memref<16x128xbf16, #tpu.memory_space<vmem>>) attributes {dimension_semantics = [#tpu.dimension_semantics<parallel>, #tpu.dimension_semantics<parallel>], iteration_bounds = array<i64: 2, 1>, scalar_prefetch = 0 : i64, scratch_operands = 1 : i64, tpu.core_type = #tpu.core_type<tc>, window_params = [{transform_indices = @transform_0, window_bounds = array<i64: 1, 8, 128>}, {transform_indices = @transform_1, window_bounds = array<i64: 1, 8, 1>}, {transform_indices = @transform_2, window_bounds = array<i64: 1, 1, 8, 128>}, {transform_indices = @transform_3, window_bounds = array<i64: 1, 1, 8, 1>}, {pipeline_mode = #tpu.pipeline_mode<synchronous>, transform_indices = @transform_4, window_bounds = array<i64: 1, 128>}, {pipeline_mode = #tpu.pipeline_mode<synchronous>, transform_indices = @transform_5, window_bounds = array<i64: 1, 128>}, {pipeline_mode = #tpu.pipeline_mode<synchronous>, transform_indices = @transform_6, window_bounds = array<i64: 640, 128>}, {pipeline_mode = #tpu.pipeline_mode<synchronous>, transform_indices = @transform_7, window_bounds = array<i64: 1, 128>}, {pipeline_mode = #tpu.pipeline_mode<synchronous>, transform_indices = @transform_8, window_bounds = array<i64: 128, 128>}, {pipeline_mode = #tpu.pipeline_mode<synchronous>, transform_indices = @transform_9, window_bounds = array<i64: 1, 128>}, {transform_indices = @transform_10, window_bounds = array<i64: 1, 8, 128>}]} {
    %c0 = arith.constant 0 : index
    %c0_0 = arith.constant 0 : index
    %0 = vector.load %arg6[%c0, %c0_0] : memref<1x128xf32, #tpu.memory_space<vmem>>, vector<1x128xf32>
    %c0_1 = arith.constant 0 : index
    %c0_2 = arith.constant 0 : index
    %1 = vector.load %arg7[%c0_1, %c0_2] : memref<1x128xf32, #tpu.memory_space<vmem>>, vector<1x128xf32>
    %c0_3 = arith.constant 0 : index
    %c0_4 = arith.constant 0 : index
    %c0_5 = arith.constant 0 : index
    %2 = vector.load %arg2[%c0_3, %c0_4, %c0_5] : memref<1x8x128xf32, #tpu.memory_space<vmem>>, vector<1x8x128xf32>
    %3 = vector.shape_cast %2 : vector<1x8x128xf32> to vector<8x128xf32>
    %c0_6 = arith.constant 0 : index
    %c0_7 = arith.constant 0 : index
    %c0_8 = arith.constant 0 : index
    %4 = vector.load %arg3[%c0_6, %c0_7, %c0_8] : memref<1x8x1xf32, #tpu.memory_space<vmem>>, vector<1x8x1xf32>
    %5 = vector.shape_cast %4 : vector<1x8x1xf32> to vector<8x1xf32>
    %cst = arith.constant dense<0.000000e+00> : vector<8xf32>
    %6 = vector.multi_reduction <add>, %3, %cst [1] : vector<8x128xf32> to vector<8xf32>
    %7 = vector.shape_cast %6 : vector<8xf32> to vector<8x1xf32>
    %cst_9 = arith.constant 3.125000e-02 : f32
    %8 = vector.broadcast %cst_9 : f32 to vector<8x1xf32>
    %9 = arith.mulf %7, %8 : vector<8x1xf32>
    %10 = vector.broadcast %9 : vector<8x1xf32> to vector<8x128xf32>
    %11 = arith.subf %3, %10 : vector<8x128xf32>
    %12 = arith.mulf %11, %11 : vector<8x128xf32>
    %cst_10 = arith.constant dense<0.000000e+00> : vector<8xf32>
    %13 = vector.multi_reduction <add>, %12, %cst_10 [1] : vector<8x128xf32> to vector<8xf32>
    %14 = vector.shape_cast %13 : vector<8xf32> to vector<8x1xf32>
    %15 = arith.mulf %9, %9 : vector<8x1xf32>
    %cst_11 = arith.constant 9.600000e+01 : f32
    %16 = vector.broadcast %cst_11 : f32 to vector<8x1xf32>
    %17 = arith.mulf %16, %15 : vector<8x1xf32>
    %18 = arith.subf %14, %17 : vector<8x1xf32>
    %cst_12 = arith.constant 3.125000e-02 : f32
    %19 = vector.broadcast %cst_12 : f32 to vector<8x1xf32>
    %20 = arith.mulf %18, %19 : vector<8x1xf32>
    %cst_13 = arith.constant 9.99999997E-7 : f32
    %21 = vector.broadcast %cst_13 : f32 to vector<8x1xf32>
    %22 = arith.addf %20, %21 : vector<8x1xf32>
    %23 = math.rsqrt %22 : vector<8x1xf32>
    %24 = vector.broadcast %23 : vector<8x1xf32> to vector<8x128xf32>
    %25 = arith.mulf %11, %24 : vector<8x128xf32>
    %26 = vector.broadcast %0 : vector<1x128xf32> to vector<8x128xf32>
    %27 = arith.mulf %25, %26 : vector<8x128xf32>
    %28 = vector.broadcast %1 : vector<1x128xf32> to vector<8x128xf32>
    %29 = arith.addf %27, %28 : vector<8x128xf32>
    %30 = vector.broadcast %5 : vector<8x1xf32> to vector<8x128xf32>
    %31 = arith.mulf %29, %30 : vector<8x128xf32>
    %32 = arith.truncf %31 : vector<8x128xf32> to vector<8x128xbf16>
    %c2 = arith.constant 2 : index
    %c0_14 = arith.constant 0 : index
    %33 = vector.load %arg13[%c2, %c0_14] : memref<16x128xbf16, #tpu.memory_space<vmem>>, vector<8x128xbf16>
    tpu.vector_store %arg13[%c2, %c0_14], %32 {strides = array<i32>} : memref<16x128xbf16, #tpu.memory_space<vmem>>, vector<8x128xbf16>,
    %c0_15 = arith.constant 0 : index
    %c0_16 = arith.constant 0 : index
    %c0_17 = arith.constant 0 : index
    %c0_18 = arith.constant 0 : index
    %34 = vector.load %arg4[%c0_15, %c0_16, %c0_17, %c0_18] : memref<1x1x8x128xf32, #tpu.memory_space<vmem>>, vector<1x1x8x128xf32>
    %35 = vector.shape_cast %34 : vector<1x1x8x128xf32> to vector<8x128xf32>
    %c0_19 = arith.constant 0 : index
    %c0_20 = arith.constant 0 : index
    %c0_21 = arith.constant 0 : index
    %c0_22 = arith.constant 0 : index
    %36 = vector.load %arg5[%c0_19, %c0_20, %c0_21, %c0_22] : memref<1x1x8x1xf32, #tpu.memory_space<vmem>>, vector<1x1x8x1xf32>
    %37 = vector.shape_cast %36 : vector<1x1x8x1xf32> to vector<8x1xf32>
    %38 = vector.extract_strided_slice %35 {offsets = [0, 0], sizes = [2, 128], strides = [1, 1]} : vector<8x128xf32> to vector<2x128xf32>
    %39 = vector.extract_strided_slice %37 {offsets = [0, 0], sizes = [2, 1], strides = [1, 1]} : vector<8x1xf32> to vector<2x1xf32>
    %cst_23 = arith.constant dense<0.000000e+00> : vector<2xf32>
    %40 = vector.multi_reduction <add>, %38, %cst_23 [1] : vector<2x128xf32> to vector<2xf32>
    %41 = vector.shape_cast %40 : vector<2xf32> to vector<2x1xf32>
    %cst_24 = arith.constant 3.125000e-02 : f32
    %42 = vector.broadcast %cst_24 : f32 to vector<2x1xf32>
    %43 = arith.mulf %41, %42 : vector<2x1xf32>
    %44 = vector.broadcast %43 : vector<2x1xf32> to vector<2x128xf32>
    %45 = arith.subf %38, %44 : vector<2x128xf32>
    %46 = arith.mulf %45, %45 : vector<2x128xf32>
    %cst_25 = arith.constant dense<0.000000e+00> : vector<2xf32>
    %47 = vector.multi_reduction <add>, %46, %cst_25 [1] : vector<2x128xf32> to vector<2xf32>
    %48 = vector.shape_cast %47 : vector<2xf32> to vector<2x1xf32>
    %49 = arith.mulf %43, %43 : vector<2x1xf32>
    %cst_26 = arith.constant 9.600000e+01 : f32
    %50 = vector.broadcast %cst_26 : f32 to vector<2x1xf32>
    %51 = arith.mulf %50, %49 : vector<2x1xf32>
    %52 = arith.subf %48, %51 : vector<2x1xf32>
    %cst_27 = arith.constant 3.125000e-02 : f32
    %53 = vector.broadcast %cst_27 : f32 to vector<2x1xf32>
    %54 = arith.mulf %52, %53 : vector<2x1xf32>
    %cst_28 = arith.constant 9.99999997E-7 : f32
    %55 = vector.broadcast %cst_28 : f32 to vector<2x1xf32>
    %56 = arith.addf %54, %55 : vector<2x1xf32>
    %57 = math.rsqrt %56 : vector<2x1xf32>
    %58 = vector.broadcast %57 : vector<2x1xf32> to vector<2x128xf32>
    %59 = arith.mulf %45, %58 : vector<2x128xf32>
    %60 = vector.broadcast %0 : vector<1x128xf32> to vector<2x128xf32>
    %61 = arith.mulf %59, %60 : vector<2x128xf32>
    %62 = vector.broadcast %1 : vector<1x128xf32> to vector<2x128xf32>
    %63 = arith.addf %61, %62 : vector<2x128xf32>
    %64 = vector.broadcast %39 : vector<2x1xf32> to vector<2x128xf32>
    %65 = arith.mulf %63, %64 : vector<2x128xf32>
    %66 = arith.truncf %65 : vector<2x128xf32> to vector<2x128xbf16>
    %c0_29 = arith.constant 0 : index
    %c0_30 = arith.constant 0 : index
    %67 = vector.load %arg13[%c0_29, %c0_30] : memref<16x128xbf16, #tpu.memory_space<vmem>>, vector<2x128xbf16>
    tpu.vector_store %arg13[%c0_29, %c0_30], %66 {strides = array<i32>} : memref<16x128xbf16, #tpu.memory_space<vmem>>, vector<2x128xbf16>,
    %68 = vector.extract_strided_slice %35 {offsets = [2, 0], sizes = [2, 128], strides = [1, 1]} : vector<8x128xf32> to vector<2x128xf32>
    %69 = vector.extract_strided_slice %37 {offsets = [2, 0], sizes = [2, 1], strides = [1, 1]} : vector<8x1xf32> to vector<2x1xf32>
    %cst_31 = arith.constant dense<0.000000e+00> : vector<2xf32>
    %70 = vector.multi_reduction <add>, %68, %cst_31 [1] : vector<2x128xf32> to vector<2xf32>
    %71 = vector.shape_cast %70 : vector<2xf32> to vector<2x1xf32>
    %cst_32 = arith.constant 3.125000e-02 : f32
    %72 = vector.broadcast %cst_32 : f32 to vector<2x1xf32>
    %73 = arith.mulf %71, %72 : vector<2x1xf32>
    %74 = vector.broadcast %73 : vector<2x1xf32> to vector<2x128xf32>
    %75 = arith.subf %68, %74 : vector<2x128xf32>
    %76 = arith.mulf %75, %75 : vector<2x128xf32>
    %cst_33 = arith.constant dense<0.000000e+00> : vector<2xf32>
    %77 = vector.multi_reduction <add>, %76, %cst_33 [1] : vector<2x128xf32> to vector<2xf32>
    %78 = vector.shape_cast %77 : vector<2xf32> to vector<2x1xf32>
    %79 = arith.mulf %73, %73 : vector<2x1xf32>
    %cst_34 = arith.constant 9.600000e+01 : f32
    %80 = vector.broadcast %cst_34 : f32 to vector<2x1xf32>
    %81 = arith.mulf %80, %79 : vector<2x1xf32>
    %82 = arith.subf %78, %81 : vector<2x1xf32>
    %cst_35 = arith.constant 3.125000e-02 : f32
    %83 = vector.broadcast %cst_35 : f32 to vector<2x1xf32>
    %84 = arith.mulf %82, %83 : vector<2x1xf32>
    %cst_36 = arith.constant 9.99999997E-7 : f32
    %85 = vector.broadcast %cst_36 : f32 to vector<2x1xf32>
    %86 = arith.addf %84, %85 : vector<2x1xf32>
    %87 = math.rsqrt %86 : vector<2x1xf32>
    %88 = vector.broadcast %87 : vector<2x1xf32> to vector<2x128xf32>
    %89 = arith.mulf %75, %88 : vector<2x128xf32>
    %90 = vector.broadcast %0 : vector<1x128xf32> to vector<2x128xf32>
    %91 = arith.mulf %89, %90 : vector<2x128xf32>
    %92 = vector.broadcast %1 : vector<1x128xf32> to vector<2x128xf32>
    %93 = arith.addf %91, %92 : vector<2x128xf32>
    %94 = vector.broadcast %69 : vector<2x1xf32> to vector<2x128xf32>
    %95 = arith.mulf %93, %94 : vector<2x128xf32>
    %96 = arith.truncf %95 : vector<2x128xf32> to vector<2x128xbf16>
    %c10 = arith.constant 10 : index
    %c0_37 = arith.constant 0 : index
    %97 = vector.load %arg13[%c10, %c0_37] : memref<16x128xbf16, #tpu.memory_space<vmem>>, vector<2x128xbf16>
    tpu.vector_store %arg13[%c10, %c0_37], %96 {strides = array<i32>} : memref<16x128xbf16, #tpu.memory_space<vmem>>, vector<2x128xbf16>,
    %c0_38 = arith.constant 0 : index
    %c0_39 = arith.constant 0 : index
    %98 = vector.load %arg13[%c0_38, %c0_39] : memref<16x128xbf16, #tpu.memory_space<vmem>>, vector<8x128xbf16>
    %c1 = arith.constant 1 : index
    %c0_40 = arith.constant 0 : index
    %99 = vector.load %arg13[%c1, %c0_40] : memref<16x128xbf16, #tpu.memory_space<vmem>>, vector<8x128xbf16>
    %c2_41 = arith.constant 2 : index
    %c0_42 = arith.constant 0 : index
    %100 = vector.load %arg13[%c2_41, %c0_42] : memref<16x128xbf16, #tpu.memory_space<vmem>>, vector<8x128xbf16>
    %c3 = arith.constant 3 : index
    %c0_43 = arith.constant 0 : index
    %101 = vector.load %arg13[%c3, %c0_43] : memref<16x128xbf16, #tpu.memory_space<vmem>>, vector<8x128xbf16>
    %c4 = arith.constant 4 : index
    %c0_44 = arith.constant 0 : index
    %102 = vector.load %arg13[%c4, %c0_44] : memref<16x128xbf16, #tpu.memory_space<vmem>>, vector<8x128xbf16>
    %103 = tpu.concatenate %98, %99, %100, %101, %102 in 1 : vector<8x128xbf16>, vector<8x128xbf16>, vector<8x128xbf16>, vector<8x128xbf16>, vector<8x128xbf16> -> vector<8x640xbf16>
    %c0_45 = arith.constant 0 : index
    %c0_46 = arith.constant 0 : index
    %104 = vector.load %arg8[%c0_45, %c0_46] : memref<640x128xbf16, #tpu.memory_space<vmem>>, vector<640x128xbf16>
    %cst_47 = arith.constant dense<0.000000e+00> : vector<8x128xf32>
    %105 = tpu.matmul %103, %104, %cst_47 {dimension_numbers = #tpu.dot_dimension_numbers<[1], [0], [0], [1], [0, 0, 1, 1], [], []>} : vector<8x640xbf16>, vector<640x128xbf16>, vector<8x128xf32> -> vector<8x128xf32>
    %c0_48 = arith.constant 0 : index
    %c0_49 = arith.constant 0 : index
    %106 = vector.load %arg9[%c0_48, %c0_49] : memref<1x128xf32, #tpu.memory_space<vmem>>, vector<1x128xf32>
    %107 = vector.broadcast %106 : vector<1x128xf32> to vector<8x128xf32>
    %108 = arith.addf %105, %107 : vector<8x128xf32>
    %cst_50 = arith.constant 0.000000e+00 : f32
    %109 = vector.broadcast %cst_50 : f32 to vector<8x128xf32>
    %110 = arith.maximumf %108, %109 : vector<8x128xf32>
    %111 = arith.truncf %110 : vector<8x128xf32> to vector<8x128xbf16>
    %c0_51 = arith.constant 0 : index
    %c0_52 = arith.constant 0 : index
    %112 = vector.load %arg10[%c0_51, %c0_52] : memref<128x128xbf16, #tpu.memory_space<vmem>>, vector<128x128xbf16>
    %cst_53 = arith.constant dense<0.000000e+00> : vector<8x128xf32>
    %113 = tpu.matmul %111, %112, %cst_53 {dimension_numbers = #tpu.dot_dimension_numbers<[1], [0], [0], [1], [0, 0, 1, 1], [], []>} : vector<8x128xbf16>, vector<128x128xbf16>, vector<8x128xf32> -> vector<8x128xf32>
    %c0_54 = arith.constant 0 : index
    %c0_55 = arith.constant 0 : index
    %114 = vector.load %arg11[%c0_54, %c0_55] : memref<1x128xf32, #tpu.memory_space<vmem>>, vector<1x128xf32>
    %115 = vector.broadcast %114 : vector<1x128xf32> to vector<8x128xf32>
    %116 = arith.addf %113, %115 : vector<8x128xf32>
    %117 = arith.addf %3, %116 : vector<8x128xf32>
    %c0_56 = arith.constant 0 : index
    %c0_57 = arith.constant 0 : index
    %c0_58 = arith.constant 0 : index
    %118 = vector.load %arg12[%c0_56, %c0_57, %c0_58] : memref<1x8x128xf32, #tpu.memory_space<vmem>>, vector<1x8x128xf32>
    %119 = vector.shape_cast %118 : vector<1x8x128xf32> to vector<8x128xf32>
    %120 = vector.shape_cast %117 : vector<8x128xf32> to vector<1x8x128xf32>
    tpu.vector_store %arg12[%c0_56, %c0_57, %c0_58], %120 {strides = array<i32>} : memref<1x8x128xf32, #tpu.memory_space<vmem>>, vector<1x8x128xf32>,
    return
  }
  func.func @transform_0(%arg0: i32, %arg1: i32) -> (i32, i32, i32) {
    %c0_i32 = arith.constant 0 : i32
    %c0_i32_0 = arith.constant 0 : i32
    return %arg0, %arg1, %c0_i32 : i32, i32, i32
  }
  func.func @transform_1(%arg0: i32, %arg1: i32) -> (i32, i32, i32) {
    %c0_i32 = arith.constant 0 : i32
    %c0_i32_0 = arith.constant 0 : i32
    return %arg0, %arg1, %c0_i32 : i32, i32, i32
  }
  func.func @transform_2(%arg0: i32, %arg1: i32) -> (i32, i32, i32, i32) {
    %c0_i32 = arith.constant 0 : i32
    %c0_i32_0 = arith.constant 0 : i32
    %c0_i32_1 = arith.constant 0 : i32
    return %arg0, %arg1, %c0_i32, %c0_i32_0 : i32, i32, i32, i32
  }
  func.func @transform_3(%arg0: i32, %arg1: i32) -> (i32, i32, i32, i32) {
    %c0_i32 = arith.constant 0 : i32
    %c0_i32_0 = arith.constant 0 : i32
    %c0_i32_1 = arith.constant 0 : i32
    return %arg0, %arg1, %c0_i32, %c0_i32_0 : i32, i32, i32, i32
  }
  func.func @transform_4(%arg0: i32, %arg1: i32) -> (i32, i32) {
    %c0_i32 = arith.constant 0 : i32
    %c0_i32_0 = arith.constant 0 : i32
    %c0_i32_1 = arith.constant 0 : i32
    return %c0_i32, %c0_i32_0 : i32, i32
  }
  func.func @transform_5(%arg0: i32, %arg1: i32) -> (i32, i32) {
    %c0_i32 = arith.constant 0 : i32
    %c0_i32_0 = arith.constant 0 : i32
    %c0_i32_1 = arith.constant 0 : i32
    return %c0_i32, %c0_i32_0 : i32, i32
  }
  func.func @transform_6(%arg0: i32, %arg1: i32) -> (i32, i32) {
    %c0_i32 = arith.constant 0 : i32
    %c0_i32_0 = arith.constant 0 : i32
    %c0_i32_1 = arith.constant 0 : i32
    return %c0_i32, %c0_i32_0 : i32, i32
  }
  func.func @transform_7(%arg0: i32, %arg1: i32) -> (i32, i32) {
    %c0_i32 = arith.constant 0 : i32
    %c0_i32_0 = arith.constant 0 : i32
    %c0_i32_1 = arith.constant 0 : i32
    return %c0_i32, %c0_i32_0 : i32, i32
  }
  func.func @transform_8(%arg0: i32, %arg1: i32) -> (i32, i32) {
    %c0_i32 = arith.constant 0 : i32
    %c0_i32_0 = arith.constant 0 : i32
    %c0_i32_1 = arith.constant 0 : i32
    return %c0_i32, %c0_i32_0 : i32, i32
  }
  func.func @transform_9(%arg0: i32, %arg1: i32) -> (i32, i32) {
    %c0_i32 = arith.constant 0 : i32
    %c0_i32_0 = arith.constant 0 : i32
    %c0_i32_1 = arith.constant 0 : i32
    return %c0_i32, %c0_i32_0 : i32, i32
  }
  func.func @transform_10(%arg0: i32, %arg1: i32) -> (i32, i32, i32) {
    %c0_i32 = arith.constant 0 : i32
    %c0_i32_0 = arith.constant 0 : i32
    return %arg0, %arg1, %c0_i32 : i32, i32, i32
  }
}

</mosaic_0001>

<bundles_post_ra>
// kernel: tpu_custom_call.1
= control target key start
LH: loop header
LB: loop body
LE: loop exit
PB: predicated region body
PF: predicated region fallthrough
CT: control target
= control target key end

     0   :  { %15 = vsyncpa [#allocation4], 0  ;;  %s2109_s0 = inlined_call_operand.vmem [shape: f32[2,8,128], index: 0, kind: input, shape index: {}]   ;;  %s2110_s1 = inlined_call_operand.vmem [shape: f32[2,8,1], index: 1, kind: input, shape index: {}]   ;;  %s2111_s2 = inlined_call_operand.vmem [shape: f32[2,1,8,128], index: 2, kind: input, shape index: {}]   ;;  %s2112_s3 = inlined_call_operand.vmem [shape: f32[2,1,8,1], index: 3, kind: input, shape index: {}]   ;;  %s2113_s4 = inlined_call_operand.vmem [shape: f32[1,128], index: 4, kind: input, shape index: {}]   ;;  %s2114_s5 = inlined_call_operand.vmem [shape: f32[1,128], index: 5, kind: input, shape index: {}]   ;;  %s2115_s6 = inlined_call_operand.hbm [shape: bf16[640,128], index: 6, kind: input, shape index: {}]   ;;  %s2116_s7 = inlined_call_operand.vmem [shape: f32[1,128], index: 7, kind: input, shape index: {}]   ;;  %s2117_s8 = inlined_call_operand.hbm [shape: bf16[128,128], index: 8, kind: input, shape index: {}]   ;;  %s2118_s9 = inlined_call_operand.vmem [shape: f32[1,128], index: 9, kind: input, shape index: {}]   ;;  %s2119_s10 = inlined_call_operand.hbm [shape: f32[2,8,128], index: 10, kind: output, shape index: {}]  }
   0x1   :  { %16 = vsyncpa [#allocation7], 0 }
   0x2   :  { %17 = vsyncpa [#allocation5], 0 }
   0x3   :  { %19 = vsyncpa [#allocation5 + $0x1], 0  ;;  %s1870_s13 = smov 0   ;;  %s1872_s14 = smov 0  }
   0x4   :  { %s1874_s15 = smov 0   ;;  %s1876_s16 = smov 0  }
   0x5   :  { %s1878_s17 = smov 0   ;;  %s1880_s18 = smov 0  }
   0x6 LB: > { %2123 = sst [smem:[#allocation12_spill]] %s1801_s17  ;;  %s1350_s19 = sadd.s32 4294967295, %s1805_s18   ;;  %s1805_s18 = sphi %s1880_s18, %s25_s18   ;;  %s1801_s17 = sphi %s1878_s17, %s2133_s17   ;;  %s1797_s16 = sphi %s1876_s16, %s2132_s16   ;;  %s1793_s15 = sphi %s1874_s15, %s2136_s15   ;;  %s1789_s14 = sphi %s1872_s14, %s2135_s14   ;;  %s1785_s13 = sphi %s1870_s13, %s2134_s13  }
   0x7   : > { %s1351_s20 = sadd.s32 4294967294, %s1805_s18   ;;  %s37_s21 = sadd.s32 1, %s1801_s17 }
   0x8   : > { %s284_s22 = sadd.s32 1, %s1793_s15  ;;  %p39_p0 = scmp.ge.s32.totalorder %s37_s21, 2 }
   0x9   : > { %p294_p1 = scmp.ne.s32.totalorder %s1793_s15, %s1789_s14  ;;  %p295_p2 = scmp.eq.s32.totalorder %s1350_s19, 1 }
   0xa   : > { %p300_p3 = scmp.ne.s32.totalorder %s1789_s14, %s1785_s13  ;;  %s2138_s21 = smov (%p39_p0, %s37_s21), 0 }
   0xb   : > { %2124 = sst [smem:[#allocation13_spill]] %s2138_s21  ;;  %p1910_p4 = por %p295_p2, %p294_p1 }
   0xc   : > { %p301_p5 = scmp.eq.s32.totalorder %s1351_s20, 1  ;;  %s279_s24 = ssub.s32 %s1801_s17, %s2138_s21 }
   0xd   : > { %s2125_s23 = scalar_select %p1910_p4, 1, 0 }
   0xe   : > { %p1352_p6 = scmp.ge.s32.totalorder %s1805_s18, 1  ;;  %p282_p7 = scmp.eq.s32.totalorder %s279_s24, 0 }
   0xf   : > { %p1917_p8 = por %p301_p5, %p300_p3  ;;  %p308_p9 = scmp.lt.s32.totalorder %s1805_s18, 3 }
  0x10   : > { %s1923_s26 = scalar_select %p282_p7, %s1793_s15, %s284_s22  }
  0x11   : > { %s2126_s25 = scalar_select %p1917_p8, 1, 0 }
  0x12   : > { %p1925_p10 = pnand %p1352_p6, %p308_p9  ;;  %p1929_p11 = scmp.eq.s32.totalorder %s1350_s19, 0 }
  0x13   : > { %s1807_s29 = smov [#allocation3]   ;;  %s1808_s12 = smov [#allocation6]  }
  0x14   : > { %p1538_p12 = pneg %p1925_p10  ;;  %s326_s30 = sshll.u32 %s1807_s29, 4  ;;  %s327_s30 = int_to_ptr.vmem [resolvable:$true] %s326_s30 }
  0x15   : > { %s342_s20 = sshll.u32 %s1808_s12, 4  ;;  %s1680_s19 = scalar_lea.vmem %s327_s30, 5120  ;;  %s343_s20 = int_to_ptr.vmem [resolvable:$true] %s342_s20 }
  0x16   : > { %p1937_p13 = pnand %p1929_p11, %p1538_p12  ;;  %p1681_p1 = scmp.ne.s32.totalorder %s327_s30, %s1680_s19 }
  0x17   : > { %p1688_p5 = scmp.lt.s32.totalorder %s327_s30, %s327_s30  ;;  %p1689_p6 = scmp.lt.s32.totalorder %s1680_s19, %s1680_s19 }
  0x18   : > { %p1671_p0 = pneg %p1937_p13 }
  0x19   : > { %p1690_p7 = por %p1689_p6, %p1688_p5 }
  0x1a   : > { %p1683_p2 = pnand %p1681_p1, %p1671_p0 }
  0x1c   : > { %p1684_p3 = pneg %p1683_p2 }
  0x1e   : > { %p1691_p9 = pnand %p1690_p7, %p1684_p3 }
  0x20   : > { %1694 = shalt.err (!%p1691_p9)
}
  0x21   : > { %s1809_s22 = smov 64   ;;  %s1810_s24 = smov 4  }
  0x22   : > { %1541 = dma.hbm_to_vmem [thread:$0]  (!%p1937_p13), %s2115_s6, 5120, %s327_s30, [#allocation4], %s1809_s22, %s1809_s22, %s1810_s24  }
  0x23   : > { %s1706_s21 = scalar_lea.vmem %s343_s20, 1024  ;;  %p1714_p8 = scmp.lt.s32.totalorder %s343_s20, %s343_s20 }
  0x24   : > { %p1707_p12 = scmp.ne.s32.totalorder %s343_s20, %s1706_s21  ;;  %p1715_p4 = scmp.lt.s32.totalorder %s1706_s21, %s1706_s21 }
  0x26   : > { %p1709_p1 = pnand %p1707_p12, %p1671_p0  ;;  %p1716_p5 = por %p1715_p4, %p1714_p8 }
  0x28   : > { %p1710_p2 = pneg %p1709_p1 }
  0x2a   : > { %p1717_p3 = pnand %p1716_p5, %p1710_p2 }
  0x2c   : > { %1720 = shalt.err (!%p1717_p3)
}
  0x2d   : > { %1544 = dma.hbm_to_vmem [thread:$0]  (!%p1937_p13), %s2117_s8, 1024, %s343_s20, [#allocation7], %s1809_s22, %s1809_s22, %s1810_s24  }
  0x2e   : > { %401 = sbr.rel (%p1925_p10) target bundleno = 837 (0x345), region = 60 }
  0x33   : > { %1772 = dma.done.wait (%p1929_p11), [#allocation4], 5120  }
  0x34   : > { %1774 = vsyncadd (%p1929_p11), [#allocation4], 4294962176 }
  0x35   : > { %1776 = dma.done.wait (%p1929_p11), [#allocation7], 1024  }
  0x36   : > { %1778 = vsyncadd (%p1929_p11), [#allocation7], 4294966272  ;;  %p466_p4 = scmp.lt.s32.totalorder %s1797_s16, 1  ;;  %vm572_vm0 = vcmask 1043458   ;;  %vm545_vm1 = vcmask 1041408   ;;  %v1811_v4 = vmov 0  }
  0x37   : > { %1609 = vset.pattern.permute.xlu0 %v1811_v4  ;;  %1610 = vset.pattern.permute.xlu1 %v1811_v4  ;;  %v1611_v20 = vld [vmem:[#allocation3 + $0x78] sm:$0xff]   ;;  %v1615_v24 = vld [vmem:[#allocation3 + $0x70] sm:$0xff]   ;;  %v1619_v29 = vld [vmem:[#allocation3 + $0x68] sm:$0xff]   ;;  %v1812_v53 = vmov 0.0   ;;  %vm1813_vm2 = vmmov 0   ;;  %s463_s28 = sand.u32 1, %s1789_s14  }
  0x38   : > { %s467_s17 = scalar_select %p466_p4, %s1797_s16, 1  ;;  %v1612_v21 = vld [vmem:[#allocation3 + $0xf8] sm:$0xff]   ;;  %v1616_v25 = vld [vmem:[#allocation3 + $0xf0] sm:$0xff]   ;;  %1426 = vmatprep.subr.bf16.mxu0 %v1611_v20  ;;  %v1620_v30 = vld [vmem:[#allocation3 + $0xe8] sm:$0xff]  }
  0x39   : > { %v1613_v22 = vld [vmem:[#allocation3 + $0x38] sm:$0xff]   ;;  %1448 = vmatprep.subr.bf16.mxu1 %v1612_v21  ;;  %v1617_v27 = vld [vmem:[#allocation3 + $0x30] sm:$0xff]   ;;  %v1621_v31 = vld [vmem:[#allocation3 + $0x28] sm:$0xff]   ;;  %s1359_s29 = sshll.u32 %s463_s28, 3  ;;  %p2130_p10 = scmp.ne.s32.totalorder %s2125_s23, 0 }
  0x3a   : > { %s1971_s21 = sshll.u32 %s467_s17, 3  ;;  %v1614_v23 = vld [vmem:[#allocation3 + $0xb8] sm:$0xff]   ;;  %1427 = vmatpush3.bf16.msra.mxu0 %v1613_v22  ;;  %v1618_v28 = vld [vmem:[#allocation3 + $0xb0] sm:$0xff]   ;;  %v1622_v32 = vld [vmem:[#allocation3 + $0xa8] sm:$0xff]   ;;  %s1422_s17 = sshll.u32 %s1797_s16, 7 }
  0x3b   : > { %s472_s11 = scalar_lea.vmem %s2109_s0, %s1971_s21  ;;  %s486_s24 = scalar_lea.vmem %s2111_s2, %s1971_s21  ;;  %1449 = vmatpush3.bf16.msra.mxu1 %v1614_v23  ;;  %1428 = vmatprep.subr.bf16.mxu0 %v1615_v24  ;;  %v1623_v33 = vld [vmem:[#allocation3 + $0x60] sm:$0xff]   ;;  %v1627_v37 = vld [vmem:[#allocation3 + $0x58] sm:$0xff]   ;;  %v1631_v41 = vld [vmem:[#allocation3 + $0x50] sm:$0xff]  }
  0x3c   : > { %v1981_v0 = vld [vmem:[%s472_s11] sm:$0xff]  ;;  %s493_s12 = scalar_lea.vmem %s2112_s3, %s1971_s21  ;;  %s479_s27 = scalar_lea.vmem %s2110_s1, %s1971_s21  ;;  %1450 = vmatprep.subr.bf16.mxu1 %v1616_v25  ;;  %v1624_v34 = vld [vmem:[#allocation3 + $0xe0] sm:$0xff]   ;;  %v1632_v42 = vld [vmem:[#allocation3 + $0xd0] sm:$0xff]  }
  0x3d   : > { %v543_v1 = vld [vmem:[%s486_s24] sm:$0xff]  ;;  %499 = vadd.xlane.f32.xlu0 %v1981_v0  ;;  %v1625_v35 = vld [vmem:[#allocation3 + $0x20] sm:$0xff]   ;;  %v1633_v43 = vld [vmem:[#allocation3 + $0x10] sm:$0xff]   ;;  %s2063_s20 = scalar_lea.hbm %s2119_s10, %s1422_s17  ;;  %s1198_s16 = scalar_lea.sflag [#allocation5], %s463_s28 }
  0x3e   : > { %v573_v2 = vsel %vm572_vm0, %v543_v1, 0.0  ;;  %v546_v3 = vsel %vm545_vm1, %v543_v1, 0.0  ;;  %v544_v19 = vld [vmem:[%s493_s12] sm:$0xff]  ;;  %1429 = vmatpush3.bf16.msra.mxu0 %v1617_v27  ;;  %v1626_v36 = vld [vmem:[#allocation3 + $0xa0] sm:$0xff]   ;;  %v1634_v44 = vld [vmem:[#allocation3 + $0x90] sm:$0xff]   ;;  %s1814_s24 = smov [#allocation8]  }
  0x3f   : > { %574 = vadd.xlane.f32.xlu1 %v573_v2  ;;  %v498_v26 = vld [vmem:[%s479_s27] sm:$0xff]  ;;  %1451 = vmatpush3.bf16.msra.mxu1 %v1618_v28  ;;  %v1635_v45 = vld [vmem:[#allocation3 + $0x48] sm:$0xff]   ;;  %v1639_v49 = vld [vmem:[#allocation3 + $0x40] sm:$0xff]   ;;  %s465_s27 = scalar_lea.vmem [#allocation8], %s1359_s29  ;;  %s1725_s29 = sshll.u32 %s1814_s24, 4  ;;  %s1726_s29 = int_to_ptr.vmem [resolvable:$false] %s1725_s29 }
  0x40   : > { %1430 = vmatprep.subr.bf16.mxu0 %v1619_v29  ;;  %1452 = vmatprep.subr.bf16.mxu1 %v1620_v30  ;;  %v1628_v38 = vld [vmem:[#allocation3 + $0xd8] sm:$0xff]   ;;  %v1636_v46 = vld [vmem:[#allocation3 + $0xc8] sm:$0xff]   ;;  %v1640_v50 = vld [vmem:[#allocation3 + $0xc0] sm:$0xff]   ;;  %s1212_s21 = sshll.u32 %s465_s27, 4  ;;  %s1727_s12 = scalar_lea.vmem %s1726_s29, 256  ;;  %s2065_s21 = int_to_ptr.vmem [resolvable:$true] %s1212_s21 }
  0x41   : > { %547 = vadd.xlane.f32.xlu0 %v546_v3  ;;  %v1629_v39 = vld [vmem:[#allocation3 + $0x18] sm:$0xff]   ;;  %v1637_v47 = vld [vmem:[#allocation3 + $0x8] sm:$0xff]   ;;  %v1641_v51 = vld [vmem:[#allocation3] sm:$0xff]   ;;  %s1721_s22 = scalar_lea.vmem %s2065_s21, 128  ;;  %p1728_p0 = scmp.lt.s32.totalorder %s2065_s21, %s1726_s29 }
  0x42   : > { %1431 = vmatpush3.bf16.msra.mxu0 %v1621_v31  ;;  %v1630_v40 = vld [vmem:[#allocation3 + $0x98] sm:$0xff]   ;;  %v1638_v48 = vld [vmem:[#allocation3 + $0x88] sm:$0xff]   ;;  %v1642_v52 = vld [vmem:[#allocation3 + $0x80] sm:$0xff]   ;;  %p1722_p8 = scmp.ne.s32.totalorder %s2065_s21, %s1721_s22  ;;  %p1729_p6 = scmp.lt.s32.totalorder %s1727_s12, %s1721_s22 }
  0x43   : > { %1453 = vmatpush3.bf16.msra.mxu1 %v1622_v32  ;;  %1432 = vmatprep.subr.bf16.mxu0 %v1623_v33 }
  0x44   : > { %1454 = vmatprep.subr.bf16.mxu1 %v1624_v34  ;;  %p1723_p11 = pnand %p1722_p8, %p2130_p10  ;;  %p1730_p7 = por %p1729_p6, %p1728_p0 }
  0x46   : > { %1433 = vmatpush3.bf16.msra.mxu0 %v1625_v35  ;;  %p1724_p13 = pneg %p1723_p11 }
  0x47   : > { %1455 = vmatpush3.bf16.msra.mxu1 %v1626_v36  ;;  %1434 = vmatprep.subr.bf16.mxu0 %v1627_v37 }
  0x48   : > { %1456 = vmatprep.subr.bf16.mxu1 %v1628_v38  ;;  %p1731_p9 = pnand %p1730_p7, %p1724_p13 }
  0x4a   : > { %1435 = vmatpush3.bf16.msra.mxu0 %v1629_v39 }
  0x4b   : > { %1457 = vmatpush3.bf16.msra.mxu1 %v1630_v40  ;;  %1436 = vmatprep.subr.bf16.mxu0 %v1631_v41 }
  0x4c   : > { %1458 = vmatprep.subr.bf16.mxu1 %v1632_v42 }
  0x4e   : > { %1437 = vmatpush3.bf16.msra.mxu0 %v1633_v43 }
  0x4f   : > { %1459 = vmatpush3.bf16.msra.mxu1 %v1634_v44  ;;  %1438 = vmatprep.subr.bf16.mxu0 %v1635_v45 }
  0x50   : > { %1460 = vmatprep.subr.bf16.mxu1 %v1636_v46 }
  0x52   : > { %1439 = vmatpush3.bf16.msra.mxu0 %v1637_v47 }
  0x53   : > { %1461 = vmatpush3.bf16.msra.mxu1 %v1638_v48  ;;  %1440 = vmatprep.subr.bf16.mxu0 %v1639_v49 }
  0x54   : > { %1462 = vmatprep.subr.bf16.mxu1 %v1640_v50  ;;  %v1647_v50 = vld [vmem:[#allocation3 + $0x138] sm:$0xff]  }
  0x56   : > { %1441 = vmatpush3.bf16.msra.mxu0 %v1641_v51 }
  0x57   : > { %1463 = vmatpush3.bf16.msra.mxu1 %v1642_v52  ;;  %1488 = vmatprep.subr.bf16.mxu0 %v1812_v53  ;;  %v1648_v52 = vld [vmem:[#allocation3 + $0x130] sm:$0xff]  }
  0x58   : > { %1508 = vmatprep.subr.bf16.mxu1 %v1812_v53 }
  0xc6   : > { %v500_v5 = vpop.xlane.xlu0 %499 }
  0xc7   : > { %v1986_v6 = vmul.f32 0.03125, %v500_v5 }
  0xc8   : > { %v575_v7 = vpop.xlane.xlu1 %574 }
  0xc9   : > { %v1988_v8 = vmul.f32 0.03125, %v575_v7  ;;  %v1992_v9 = vsub.f32 %v1981_v0, %v1986_v6  ;;  %v506_v54 = vmul.f32 %v1986_v6, %v1986_v6 }
  0xca   : > { %v548_v11 = vpop.xlane.xlu0 %547 }
  0xcb   : > { %v1995_v10 = vsub.f32 %v543_v1, %v1988_v8  ;;  %v1997_v12 = vmul.f32 0.03125, %v548_v11  ;;  %v503_v13 = vmul.f32 %v1992_v9, %v1992_v9  ;;  %v582_v55 = vmul.f32 %v1988_v8, %v1988_v8 }
  0xcc   : > { %v507_v56 = vmul.f32 96.0, %v506_v54  ;;  %v1649_v54 = vld [vmem:[#allocation3 + $0x128] sm:$0xff]  }
  0xcd   : > { %v578_v14 = vmul.f32 %v1995_v10, %v1995_v10  ;;  %v2004_v15 = vsub.f32 %v543_v1, %v1997_v12  ;;  %504 = vadd.xlane.f32.xlu1 %v503_v13  ;;  %v555_v57 = vmul.f32 %v1997_v12, %v1997_v12  ;;  %v583_v61 = vmul.f32 96.0, %v582_v55  ;;  %v1364_v12 = vld [vmem:[%s2113_s4] ss:$0 sm:$0xff]  ;;  %v1650_v55 = vld [vmem:[#allocation3 + $0x120] sm:$0xff]  }
  0xcf   : > { %v579_v16 = vsel %vm572_vm0, %v578_v14, 0.0  ;;  %v551_v17 = vmul.f32 %v2004_v15, %v2004_v15  ;;  %v556_v63 = vmul.f32 96.0, %v555_v57  ;;  %v1365_v14 = vld [vmem:[%s2114_s5] ss:$0 sm:$0xff]  ;;  %v1652_v57 = vld [vmem:[#allocation3 + $0x110] sm:$0xff]  }
  0xd1   : > { %580 = vadd.xlane.f32.xlu1 %v579_v16  ;;  %v552_v18 = vsel %vm545_vm1, %v551_v17, 0.0 }
  0xd2   : > { %553 = vadd.xlane.f32.xlu0 %v552_v18 }
  0xe2   : > { %566 = vperm.xlu1 %1610, %v544_v19  }
  0xe8   : > { %529 = vperm.xlu0 %1609, %v498_v26  }
 0x156   : > { %v505_v58 = vpop.xlane.xlu1 %504 }
 0x157   : > { %v508_v59 = vsub.f32 %v505_v58, %v507_v56  ;;  %v1651_v56 = vld [vmem:[#allocation3 + $0x118] sm:$0xff]   ;;  %v1653_v58 = vld [vmem:[#allocation3 + $0x108] sm:$0xff]  }
 0x159   : > { %v509_v60 = vmul.f32 0.03125, %v508_v59 }
 0x15a   : > { %v581_v62 = vpop.xlane.xlu1 %580 }
 0x15b   : > { %v510_v1 = vadd.f32 1e-06, %v509_v60  ;;  %v584_v2 = vsub.f32 %v581_v62, %v583_v61  ;;  %v554_v3 = vpop.xlane.xlu0 %553  ;;  %v1654_v60 = vld [vmem:[#allocation3 + $0x100] sm:$0xff]  }
 0x15c   : > { %v557_v4 = vsub.f32 %v554_v3, %v556_v63  ;;  %v1655_v63 = vld [vmem:[#allocation6 + $0x38] sm:$0xff]   ;;  %v1658_v3 = vld [vmem:[#allocation6 + $0x20] sm:$0xff]  }
 0x15d   : > { %1663 = vrsqrt.f32 %v510_v1  ;;  %v585_v5 = vmul.f32 0.03125, %v584_v2  ;;  %v1656_v1 = vld [vmem:[#allocation6 + $0x30] sm:$0xff]   ;;  %v1657_v2 = vld [vmem:[#allocation6 + $0x28] sm:$0xff]  }
 0x15e   : > { %v558_v6 = vmul.f32 0.03125, %v557_v4  ;;  %v567_v25 = vpop.permute.xlu1 %566  ;;  %v1659_v4 = vld [vmem:[#allocation6 + $0x18] sm:$0xff]  }
 0x15f   : > { %v586_v7 = vadd.f32 1e-06, %v585_v5  ;;  %v1660_v5 = vld [vmem:[#allocation6 + $0x10] sm:$0xff]  }
 0x160   : > { %v559_v11 = vadd.f32 1e-06, %v558_v6  ;;  %v1661_v6 = vld [vmem:[#allocation6 + $0x8] sm:$0xff]  }
 0x161   : > { %1665 = vrsqrt.f32 %v586_v7  ;;  %v1662_v7 = vld [vmem:[#allocation6] sm:$0xff]  }
 0x162   : > { %1667 = vrsqrt.f32 %v559_v11 }
 0x163   : > { %v530_v18 = vpop.permute.xlu0 %529 }
 0x16a   : > { %v1664_v8 = vpop.eup %1663 }
 0x16b   : > { %v512_v13 = vmul.f32 %v1664_v8, %v1992_v9 }
 0x16d   : > { %v519_v16 = vmul.f32 %v1364_v12, %v512_v13 }
 0x16e   : > { %v1666_v17 = vpop.eup %1665 }
 0x16f   : > { %v1668_v19 = vpop.eup %1667  ;;  %v526_v20 = vadd.f32 %v1365_v14, %v519_v16  ;;  %v588_v21 = vmul.f32 %v1666_v17, %v1995_v10 }
 0x170   : > { %v561_v22 = vmul.f32 %v1668_v19, %v2004_v15 }
 0x171   : > { %v532_v23 = vmul.f32 %v530_v18, %v526_v20  ;;  %v589_v24 = vmul.f32 %v1364_v12, %v588_v21  ;;  %v1371_v20 = vld [vmem:[%s2116_s7] ss:$0 sm:$0xff] }
 0x172   : > { %v562_v26 = vmul.f32 %v1364_v12, %v561_v22 }
 0x173   : > { %v1425_v27 = vpack.c.bf16 %v532_v23, %v532_v23  ;;  %v590_v28 = vadd.f32 %v1365_v14, %v589_v24 }
 0x174   : > { %v563_v9 = vadd.f32 %v1365_v14, %v562_v26 }
 0x175   : > { %v537_v29 = vrot.slane %v1425_v27, 7  ;;  %v591_v30 = vmul.f32 %v590_v28, %v567_v25 }
 0x176   : > { %v569_v31 = vmul.f32 %v567_v25, %v563_v9 }
 0x177   : > { %v538_v32 = vrot.slane %v537_v29, 4  ;;  %541 = vst [vmem:[#allocation2] sm:$0xe] %v537_v29  ;;  %v592_v33 = vpack.c.bf16 %v591_v30, %v591_v30  ;;  %v1412_v29 = vld [vmem:[%s2118_s9] ss:$0 sm:$0xff] }
 0x178   : > { %v570_v34 = vpack.c.bf16 %v569_v31, %v569_v31 }
 0x179   : > { %542 = vst [vmem:[#allocation2 + $0x4] sm:$0x1] %v538_v32  ;;  %593 = vst [vmem:[#allocation2 + $0x4] sm:$0x2] %v592_v33 }
 0x17a   : > { %571 = vst [vmem:[#allocation2] sm:$0x1] %v570_v34 }
 0x17e   : > { %v597_v10 = vld [vmem:[#allocation2] sm:$0xe] }
 0x17f   : > { %v599_v59 = vld [vmem:[#allocation2] sm:$0xc] }
 0x180   : > { %v598_v35 = vld [vmem:[#allocation2 + $0x4] sm:$0x3] }
 0x181   : > { %v596_v15 = vld [vmem:[#allocation2 + $0x4] sm:$0x1]  ;;  %v1369_v36 = vcombine.low %v597_v10, %v598_v35  ;;  %v595_v37 = vld [vmem:[#allocation2] sm:$0xf]  ;;  %v1370_v61 = vcombine.low %v599_v59, %v598_v35 }
 0x182   : > { %v1367_v38 = vcombine.low %v595_v37, %v596_v15  ;;  %v1368_v42 = vcombine.low %v597_v10, %v596_v15  ;;  %v594_v51 = vld [vmem:[#allocation2] sm:$0xf] }
 0x183   : > { %v622_v39 = vshrl.u32 %v1369_v36, 16  ;;  %v625_v40 = vshll.u32 %v1369_v36, 16  ;;  %v633_v62 = vrot.slane %v1370_v61, 2 }
 0x184   : > { %v608_v41 = vshll.u32 %v1367_v38, 16  ;;  %v606_v45 = vshrl.u32 %v1367_v38, 16  ;;  %v616_v49 = vrot.slane %v1368_v42, 1 }
 0x185   : > { %v624_v43 = vrot.slane %v622_v39, 1  ;;  %v627_v44 = vrot.slane %v625_v40, 2 }
 0x186   : > { %v610_v46 = vrot.slane %v608_v41, 1 }
 0x187   : > { %v628_v47 = vor.u32 %v627_v44, %v624_v43 }
 0x188   : > { %v611_v48 = vor.u32 %v610_v46, %v606_v45 }
 0x189   : > { %1034 = vmatprep.mubr.bf16.mxu1 %v628_v47 }
 0x18a   : > { %994 = vmatprep.mubr.bf16.mxu0 %v611_v48  ;;  %1035 = vmatmul.mubr.bf16.vlgmr.msra.gmra.mxu1 %v616_v49 }
 0x18b   : > { %995 = vmatmul.mubr.bf16.vlgmr.msra.gmra.mxu0 %v594_v51  ;;  %1524 = vmatprep.mubr.msk.bf16.mxu1 %vm1813_vm2, %v1812_v53 }
 0x18c   : > { %1489 = vmatpush3.bf16.msra.mxu0 %v1647_v50  ;;  %1504 = vmatprep.mubr.msk.bf16.mxu0 %vm1813_vm2, %v1812_v53 }
 0x18d   : > { %1490 = vmatprep.subr.bf16.mxu0 %v1812_v53  ;;  %1509 = vmatpush3.bf16.msra.mxu1 %v1655_v63 }
 0x18e   : > { %1510 = vmatprep.subr.bf16.mxu1 %v1812_v53 }
 0x190   : > { %1491 = vmatpush3.bf16.msra.mxu0 %v1648_v52 }
 0x191   : > { %1492 = vmatprep.subr.bf16.mxu0 %v1812_v53  ;;  %1511 = vmatpush3.bf16.msra.mxu1 %v1656_v1 }
 0x192   : > { %1512 = vmatprep.subr.bf16.mxu1 %v1812_v53 }
 0x194   : > { %1493 = vmatpush3.bf16.msra.mxu0 %v1649_v54 }
 0x195   : > { %1494 = vmatprep.subr.bf16.mxu0 %v1812_v53  ;;  %1513 = vmatpush3.bf16.msra.mxu1 %v1657_v2 }
 0x196   : > { %1514 = vmatprep.subr.bf16.mxu1 %v1812_v53 }
 0x198   : > { %1495 = vmatpush3.bf16.msra.mxu0 %v1650_v55 }
 0x199   : > { %1496 = vmatprep.subr.bf16.mxu0 %v1812_v53  ;;  %1515 = vmatpush3.bf16.msra.mxu1 %v1658_v3 }
 0x19a   : > { %1516 = vmatprep.subr.bf16.mxu1 %v1812_v53 }
 0x19c   : > { %1497 = vmatpush3.bf16.msra.mxu0 %v1651_v56 }
 0x19d   : > { %1498 = vmatprep.subr.bf16.mxu0 %v1812_v53  ;;  %1517 = vmatpush3.bf16.msra.mxu1 %v1659_v4 }
 0x19e   : > { %1518 = vmatprep.subr.bf16.mxu1 %v1812_v53 }
 0x1a0   : > { %1499 = vmatpush3.bf16.msra.mxu0 %v1652_v57 }
 0x1a1   : > { %1500 = vmatprep.subr.bf16.mxu0 %v1812_v53  ;;  %1519 = vmatpush3.bf16.msra.mxu1 %v1660_v5 }
 0x1a2   : > { %1520 = vmatprep.subr.bf16.mxu1 %v1812_v53 }
 0x1a4   : > { %1501 = vmatpush3.bf16.msra.mxu0 %v1653_v58 }
 0x1a5   : > { %1502 = vmatprep.subr.bf16.mxu0 %v1812_v53  ;;  %1521 = vmatpush3.bf16.msra.mxu1 %v1661_v6 }
 0x1a6   : > { %1522 = vmatprep.subr.bf16.mxu1 %v1812_v53 }
 0x1a8   : > { %1503 = vmatpush3.bf16.msra.mxu0 %v1654_v60 }
 0x1a9   : > { %1523 = vmatpush3.bf16.msra.mxu1 %v1662_v7 }
 0x1ab   : > { %1505 = vmatmul.mubr.bf16.vlgmr.msra.gmra.mxu0 %v633_v62 }
 0x24a   : > { %v1464_v11 = vpop.f32.mrf.mxu1 }
 0x24b   : > { %v1442_v8 = vpop.f32.mrf.mxu0 }
 0x24c   : > { %v1465_v12 = vpop.f32.mrf.mxu1 }
 0x24d   : > { %v1443_v13 = vpop.f32.mrf.mxu0  ;;  %v1466_v22 = vadd.f32 %v1465_v12, %v1464_v11 }
 0x24e   : > { %v1467_v14 = vpop.f32.mrf.mxu1  ;;  %v1444_v19 = vadd.f32 %v1443_v13, %v1442_v8 }
 0x24f   : > { %v1445_v16 = vpop.f32.mrf.mxu0 }
 0x250   : > { %v1468_v17 = vpop.f32.mrf.mxu1  ;;  %v997_v21 = vadd.f32 %v1444_v19, %v1371_v20 }
 0x251   : > { %v1446_v18 = vpop.f32.mrf.mxu0 }
 0x252   : > { %v1037_v53 = vadd.f32 %v1466_v22, %v997_v21 }
 0x26b   : > { %v1076_v23 = vpop.f32.mrf.mxu0 }
 0x26c   : > { %v1077_v24 = vadd.f32 %v1076_v23, %v1037_v53 }
 0x26d   : > { %v1506_v25 = vpop.f32.mrf.mxu0 }
 0x26e   : > { %v1082_v26 = vmax.f32 %v1077_v24, 0.0 }
 0x26f   : > { %v1079_v27 = vpop.f32.mrf.mxu0 }
 0x270   : > { %v1083_v28 = vpack.c.bf16 %v1082_v26, %v1082_v26 }
 0x271   : > { %v1507_v9 = vpop.f32.mrf.mxu0 }
 0x272   : > { %1525 = vmatmul.mubr.bf16.vlgmr.msra.gmra.mxu1 %v1083_v28 }
 0x332   : > { %v1189_v30 = vpop.f32.mrf.mxu1 }
 0x333   : > { %v1190_v31 = vadd.f32 %v1412_v29, %v1189_v30 }
 0x334   : > { %v1526_v32 = vpop.f32.mrf.mxu1 }
 0x335   : > { %v1195_v33 = vadd.f32 %v1190_v31, %v1981_v0 }
 0x336   : > { %v1192_v34 = vpop.f32.mrf.mxu1 }
 0x337   : > { %1196 = vst [vmem:[%s465_s27] sm:$0xff] %v1195_v33 }
 0x338   : > { %v1527_v10 = vpop.f32.mrf.mxu1 }
 0x339   : > { %1734 = shalt.err (!%p1731_p9)
}
 0x33a   : > { %s1735_s19 = scalar_lea.hbm %s2063_s20, 128  ;;  %s1739_s27 = scalar_lea.hbm %s2119_s10, 256 }
 0x33b   : > { %p1736_p12 = scmp.ne.s32.totalorder %s2063_s20, %s1735_s19  ;;  %p1740_p5 = scmp.lt.s32.totalorder %s2063_s20, %s2119_s10 }
 0x33c   : > { %p1741_p3 = scmp.lt.s32.totalorder %s1739_s27, %s1735_s19 }
 0x33d   : > { %p1737_p1 = pnand %p1736_p12, %p2130_p10 }
 0x33e   : > { %p1742_p4 = por %p1741_p3, %p1740_p5 }
 0x33f   : > { %p1738_p2 = pneg %p1737_p1 }
 0x341   : > { %p1743_p8 = pnand %p1742_p4, %p1738_p2 }
 0x343   : > { %1746 = shalt.err (!%p1743_p8)
}
 0x344   : > { %1536 = dma.vmem_to_hbm [thread:$0]  (%p2130_p10), %s2065_s21, 128, %s2063_s20, %s1198_s16  }
 0x345 PF: > { %p1553_p11 = scmp.ge.s32.totalorder %s1805_s18, 2  ;;  %s1224_s22 = sand.u32 1, %s1785_s13  }
 0x346   : > { %p2131_p13 = scmp.ne.s32.totalorder %s2126_s25, 0  ;;  %s1225_s24 = scalar_lea.sflag [#allocation5], %s1224_s22 }
 0x348   : > { %p1546_p0 = pnand %p1553_p11, %p2131_p13 }
 0x34a   : > { %p1547_p6 = pneg %p1546_p0 }
 0x34c   : > { %1780 = dma.done.wait (%p1547_p6), %s1225_s24, 128  }
 0x34d   : > { %1782 = vsyncadd (%p1547_p6), %s1225_s24, 4294967168  ;;  %s25_s18 = sadd.s32 1, %s1805_s18   ;;  %s2132_s16 = sld [smem:[#allocation12_spill]] }
 0x34e   : > { %p22_p7 = scmp.ge.s32.totalorder %s25_s18, 4   ;;  %s2133_s17 = sld [smem:[#allocation13_spill]] }
 0x34f   : > { %s2134_s13 = smov %s1789_s14  ;;  %s2135_s14 = smov %s1793_s15 }
 0x350   : > { %s2136_s15 = smov %s1923_s26  ;;  %24 = sbr.rel (!%p22_p7) target bundleno = 6 (0x6), region = 113 }
 0x355   :  { %1230 = vsyncpa [#allocation4], 1 }
 0x356   :  { %1232 = vsyncpa [#allocation4 + $0x1], 1 }
 0x357   :  { %1233 = vsyncpa [#allocation7], 1 }
 0x358   :  { %1234 = vsyncpa [#allocation5], 1 }
 0x359   :  { %1236 = vsyncpa [#allocation5 + $0x1], 1 }

</bundles_post_ra>
